<compile_context>
chip_gen: v7x
topology: tpu7x:2x2x1
jax: 0.10.0
libtpu: 0.0.40
codegen_flags: <defaults>
</compile_context>

<pallas_src>
import functools
import math

import jax
import jax.numpy as jnp
from jax.experimental import pallas as pl
from jax.experimental.pallas import tpu as pltpu


def _round_up(x, m):
    return ((x + m - 1) // m) * m


def _embed_onehot_kernel(tok_ref, table_ref, out_ref, *, scale, vocab_pad):
    """Small-vocab path: gather == one-hot matmul on the MXU.

    tok_ref:   (TB, 1)  int32, VMEM
    table_ref: (vocab_pad, emb), VMEM, resident across the grid
    out_ref:   (TB, emb)
    """
    tok = tok_ref[...]                                               # (TB, 1)
    ids = jax.lax.broadcasted_iota(jnp.int32, (tok.shape[0], vocab_pad), 1)
    one_hot = (ids == tok).astype(table_ref.dtype)                   # (TB, vocab_pad)
    acc = jnp.dot(one_hot, table_ref[...], preferred_element_type=jnp.float32)
    out_ref[...] = (acc * scale).astype(out_ref.dtype)


def _embed_gather_kernel(tok_ref, table_ref, out_ref, *, scale, vocab, block_tokens):
    """Larger-vocab path: VMEM-resident table, per-row dynamic gather.

    tok_ref:   (n_pad,) int32 in SMEM (scalar prefetch)
    table_ref: (vocab, 1, emb), VMEM, resident across the grid
    out_ref:   (TB, 1, emb)
    """
    base = pl.program_id(0) * block_tokens

    def body(t, carry):
        tok = jnp.clip(tok_ref[base + t], 0, vocab - 1)
        row = table_ref[tok]                                         # (1, emb)
        out_ref[t] = (row.astype(jnp.float32) * scale).astype(out_ref.dtype)
        return carry

    jax.lax.fori_loop(0, block_tokens, body, 0, unroll=8)


def token_embedding(tokens, emb_table, *, block_tokens=128, onehot_max_vocab=2048):
    """tokens: int array, any shape. emb_table: (vocab, emb). Returns tokens.shape + (emb,)."""
    vocab, emb = emb_table.shape
    scale = float(math.sqrt(emb))
    out_dtype = emb_table.dtype
    itemsize = jnp.dtype(out_dtype).itemsize

    flat = tokens.reshape(-1).astype(jnp.int32)
    n = flat.shape[0]

    # Block of tokens per grid step: multiple of 8 sublanes, capped for tiny inputs.
    tb = max(8, min(_round_up(block_tokens, 8), _round_up(n, 8)))
    n_pad = _round_up(n, tb)
    flat = jnp.pad(flat, (0, n_pad - n), constant_values=-1)  # pad ids never match / get clamped
    grid = (n_pad // tb,)

    # TODO(synk): tables too big for VMEM (> ~48 MiB; v7x has only 64 MiB/TC) need an
    # HBM-resident, manually double-buffered row-DMA gather path instead of a resident table.
    table_bytes = vocab * emb * itemsize
    assert table_bytes <= 48 * 2**20, "embedding table too large for VMEM-resident path"

    if vocab <= onehot_max_vocab:
        # ---- Path A: one-hot MXU matmul, table resident in VMEM ----
        vocab_pad = _round_up(vocab, 128)
        table = emb_table
        if vocab_pad != vocab:
            table = jnp.pad(emb_table, ((0, vocab_pad - vocab), (0, 0)))
        tok2d = flat.reshape(n_pad, 1)

        needed = (vocab_pad * emb * itemsize            # resident table
                  + 2 * tb * emb * itemsize             # double-buffered output tiles
                  + 2 * tb * 4                          # double-buffered token tiles
                  + tb * vocab_pad * 4 + tb * emb * 4)  # one-hot + f32 acc temporaries
        vmem_limit = int(min(max(needed + (4 << 20), 32 << 20), 60 << 20))

        out = pl.pallas_call(
            functools.partial(_embed_onehot_kernel, scale=scale, vocab_pad=vocab_pad),
            out_shape=jax.ShapeDtypeStruct((n_pad, emb), out_dtype),
            grid_spec=pltpu.PrefetchScalarGridSpec(
                num_scalar_prefetch=0,
                grid=grid,
                in_specs=[
                    pl.BlockSpec((tb, 1), lambda i: (i, 0)),           # token ids
                    pl.BlockSpec((vocab_pad, emb), lambda i: (0, 0)),  # resident table
                ],
                out_specs=pl.BlockSpec((tb, emb), lambda i: (i, 0)),
            ),
            compiler_params=pltpu.CompilerParams(
                dimension_semantics=("parallel",),
                vmem_limit_bytes=vmem_limit,
            ),
            cost_estimate=pl.CostEstimate(
                flops=2 * n_pad * vocab_pad * emb,
                transcendentals=0,
                bytes_accessed=vocab_pad * emb * itemsize + n_pad * 4 + n_pad * emb * itemsize,
            ),
        )(tok2d, table)
        out = out[:n]
    else:
        # ---- Path B: VMEM-resident table + in-kernel dynamic row gather ----
        table3 = emb_table.reshape(vocab, 1, emb)
        needed = vocab * emb * itemsize + 2 * tb * emb * itemsize
        vmem_limit = int(min(max(needed + (4 << 20), 32 << 20), 60 << 20))

        out = pl.pallas_call(
            functools.partial(_embed_gather_kernel, scale=scale, vocab=vocab,
                              block_tokens=tb),
            out_shape=jax.ShapeDtypeStruct((n_pad, 1, emb), out_dtype),
            grid_spec=pltpu.PrefetchScalarGridSpec(
                num_scalar_prefetch=1,  # token ids -> SMEM, also visible to index_maps
                grid=grid,
                in_specs=[
                    pl.BlockSpec((vocab, 1, emb), lambda i, tok: (0, 0, 0)),  # resident table
                ],
                out_specs=pl.BlockSpec((tb, 1, emb), lambda i, tok: (i, 0, 0)),
            ),
            compiler_params=pltpu.CompilerParams(
                dimension_semantics=("parallel",),
                vmem_limit_bytes=vmem_limit,
            ),
            cost_estimate=pl.CostEstimate(
                flops=n_pad * emb,
                transcendentals=0,
                bytes_accessed=vocab * emb * itemsize + n_pad * 4 + n_pad * emb * itemsize,
            ),
        )(flat, table3)
        out = out.reshape(n_pad, emb)[:n]

    return out.reshape(tokens.shape + (emb,))


if __name__ == "__main__":
    # Small, deterministic setup consistent with the module.
    vocab_size = 64
    emb_size = 128          # lane-aligned embedding width
    seq, batch = 8, 2

    key = jax.random.PRNGKey(0)
    k_emb, k_tok = jax.random.split(key)

    # nn.Embedding weight ~ N(0, 1); synthetic deterministic init.
    emb_table = jax.random.normal(k_emb, (vocab_size, emb_size), dtype=jnp.float32)
    tokens = jax.random.randint(k_tok, (seq, batch), 0, vocab_size, dtype=jnp.int32)

    ref = jnp.take(emb_table, tokens, axis=0) * math.sqrt(emb_size)

    # Path A: small-vocab one-hot MXU matmul (default for vocab=64).
    out = jax.block_until_ready(token_embedding(tokens, emb_table))
    assert out.shape == (seq, batch, emb_size)
    assert jnp.allclose(out, ref, atol=1e-4, rtol=1e-4)

    # Path B: VMEM-resident table + in-kernel gather (forced, exercises the large-vocab path).
    out_b = jax.block_until_ready(token_embedding(tokens, emb_table, onehot_max_vocab=0))
    assert out_b.shape == (seq, batch, emb_size)
    assert jnp.allclose(out_b, ref, atol=1e-4, rtol=1e-4)

    print("KERNEL_OK")
</pallas_src>

<mosaic_0001>
module attributes {stable_mosaic.version = 11 : i64} {
  func.func @_embed_onehot_kernel(%arg0: i32, %arg1: memref<16x1xi32, #tpu.memory_space<vmem>>, %arg2: memref<128x128xf32, #tpu.memory_space<vmem>>, %arg3: memref<16x128xf32, #tpu.memory_space<vmem>>) attributes {dimension_semantics = [#tpu.dimension_semantics<parallel>], iteration_bounds = array<i64: 1>, scalar_prefetch = 0 : i64, scratch_operands = 0 : i64, tpu.core_type = #tpu.core_type<tc>, window_params = [{transform_indices = @transform_0, window_bounds = array<i64: 16, 1>}, {pipeline_mode = #tpu.pipeline_mode<synchronous>, transform_indices = @transform_1, window_bounds = array<i64: 128, 128>}, {transform_indices = @transform_2, window_bounds = array<i64: 16, 128>}]} {
    %c0 = arith.constant 0 : index
    %c0_0 = arith.constant 0 : index
    %0 = vector.load %arg1[%c0, %c0_0] : memref<16x1xi32, #tpu.memory_space<vmem>>, vector<16x1xi32>
    %1 = tpu.iota {dimensions = array<i32: 1>} : vector<16x128xi32>
    %2 = vector.broadcast %0 : vector<16x1xi32> to vector<16x128xi32>
    %3 = arith.cmpi eq, %1, %2 : vector<16x128xi32>
    %4 = arith.extui %3 : vector<16x128xi1> to vector<16x128xi32>
    %5 = arith.sitofp %4 : vector<16x128xi32> to vector<16x128xf32>
    %c0_1 = arith.constant 0 : index
    %c0_2 = arith.constant 0 : index
    %6 = vector.load %arg2[%c0_1, %c0_2] : memref<128x128xf32, #tpu.memory_space<vmem>>, vector<128x128xf32>
    %cst = arith.constant dense<0.000000e+00> : vector<16x128xf32>
    %7 = tpu.matmul %5, %6, %cst {dimension_numbers = #tpu.dot_dimension_numbers<[1], [0], [0], [1], [0, 0, 1, 1], [], []>} : vector<16x128xf32>, vector<128x128xf32>, vector<16x128xf32> -> vector<16x128xf32>
    %cst_3 = arith.constant 11.3137083 : f32
    %8 = vector.broadcast %cst_3 : f32 to vector<16x128xf32>
    %9 = arith.mulf %7, %8 : vector<16x128xf32>
    %c0_4 = arith.constant 0 : index
    %c0_5 = arith.constant 0 : index
    %10 = vector.load %arg3[%c0_4, %c0_5] : memref<16x128xf32, #tpu.memory_space<vmem>>, vector<16x128xf32>
    tpu.vector_store %arg3[%c0_4, %c0_5], %9 {strides = array<i32>} : memref<16x128xf32, #tpu.memory_space<vmem>>, vector<16x128xf32>,
    return
  }
  func.func @transform_0(%arg0: i32) -> (i32, i32) {
    %c0_i32 = arith.constant 0 : i32
    %c0_i32_0 = arith.constant 0 : i32
    return %arg0, %c0_i32 : i32, i32
  }
  func.func @transform_1(%arg0: i32) -> (i32, i32) {
    %c0_i32 = arith.constant 0 : i32
    %c0_i32_0 = arith.constant 0 : i32
    %c0_i32_1 = arith.constant 0 : i32
    return %c0_i32, %c0_i32_0 : i32, i32
  }
  func.func @transform_2(%arg0: i32) -> (i32, i32) {
    %c0_i32 = arith.constant 0 : i32
    %c0_i32_0 = arith.constant 0 : i32
    return %arg0, %c0_i32 : i32, i32
  }
}

</mosaic_0001>

<bundles_post_ra>
// kernel: tpu_custom_call.1
= control target key start
LH: loop header
LB: loop body
LE: loop exit
PB: predicated region body
PF: predicated region fallthrough
CT: control target
= control target key end

     0   :  { %7 = vsyncpa [#allocation3], 0  ;;  %s355_s0 = inlined_call_operand.vmem [shape: s32[16,1], index: 0, kind: input, shape index: {}]   ;;  %s356_s1 = inlined_call_operand.hbm [shape: f32[128,128], index: 1, kind: input, shape index: {}]   ;;  %s357_s2 = inlined_call_operand.hbm [shape: f32[16,128], index: 2, kind: output, shape index: {}]  }
   0x1   :  { %8 = vsyncpa [#allocation4], 0  ;;  %s298_s9 = smov [#allocation2]   ;;  %s250_s13 = scalar_lea.hbm %s356_s1, 2048 }
   0x2   :  { %s16_s10 = sshll.u32 %s298_s9, 4  ;;  %p251_p0 = scmp.ne.s32.totalorder %s356_s1, %s250_s13  ;;  %s17_s10 = int_to_ptr.vmem [resolvable:$true] %s16_s10 }
   0x3   :  { %p254_p1 = scmp.lt.u32.totalorder %s250_s13, %s356_s1 }
   0x5   :  { %p256_p2 = pnand %p254_p1, %p251_p0 }
   0x7   :  { %259 = shalt.err (!%p256_p2)
}
   0x8   :  { %s260_s18 = scalar_lea.vmem %s17_s10, 2048  ;;  %p265_p4 = scmp.lt.s32.totalorder %s17_s10, %s17_s10 }
   0x9   :  { %p261_p3 = scmp.ne.s32.totalorder %s17_s10, %s260_s18  ;;  %p266_p5 = scmp.lt.s32.totalorder %s260_s18, %s260_s18 }
   0xb   :  { %p267_p6 = por %p266_p5, %p265_p4 }
   0xd   :  { %p268_p7 = pnand %p267_p6, %p261_p3 }
   0xf   :  { %271 = shalt.err (!%p268_p7)
}
  0x10   :  { %s299_s19 = smov 128   ;;  %s300_s20 = smov 8  }
  0x11   :  { %22 = dma.hbm_to_vmem [thread:$0]  %s356_s1, 2048, %s17_s10, [#allocation3], %s299_s19, %s299_s19, %s300_s20  }
  0x12   :  { %294 = dma.done.wait [#allocation3], 2048  }
  0x13   :  { %295 = vsyncadd [#allocation3], 4294965248  ;;  %v301_v0 = vmov 0   ;;  %v26_v1 = vld [vmem:[%s355_s0] sm:$0xff]  ;;  %v43_v3 = vld [vmem:[#allocation2 + $0x8] sm:$0xff]  ;;  %v28_v27 = vlaneseq  ;;  %v302_v30 = vmov 1.0  }
  0x14   :  { %249 = vset.pattern.permute.xlu0 %v301_v0  ;;  %v42_v2 = vld [vmem:[#allocation2] sm:$0xff]  ;;  %v44_v4 = vld [vmem:[#allocation2 + $0x10] sm:$0xff]  ;;  %v45_v5 = vld [vmem:[#allocation2 + $0x18] sm:$0xff] }
  0x15   :  { %31 = vperm.xlu0 %249, %v26_v1   ;;  %v27_v6 = vld [vmem:[%s355_s0 + $0x8] sm:$0xff]  ;;  %v211_v7 = vpack.c.bf16 %v43_v3, %v42_v2  ;;  %v215_v8 = vpack.c.bf16 %v45_v5, %v44_v4  ;;  %v46_v9 = vld [vmem:[#allocation2 + $0x20] sm:$0xff]  ;;  %v48_v12 = vld [vmem:[#allocation2 + $0x30] sm:$0xff]  ;;  %v29_v28 = vand.u32 127, %v28_v27  ;;  %s303_s0 = smov [#allocation5]  }
  0x16   :  { %v47_v10 = vld [vmem:[#allocation2 + $0x28] sm:$0xff]  ;;  %v49_v13 = vld [vmem:[#allocation2 + $0x38] sm:$0xff]  ;;  %v50_v15 = vld [vmem:[#allocation2 + $0x40] sm:$0xff]  ;;  %s142_s1 = sshll.u32 %s303_s0, 4  ;;  %s143_s1 = int_to_ptr.vmem [resolvable:$true] %s142_s1 }
  0x17   :  { %212 = vmatprep.subr.bf16.mxu0 %v211_v7  ;;  %v219_v11 = vpack.c.bf16 %v47_v10, %v46_v9  ;;  %v223_v14 = vpack.c.bf16 %v49_v13, %v48_v12  ;;  %v51_v16 = vld [vmem:[#allocation2 + $0x48] sm:$0xff]  ;;  %v52_v18 = vld [vmem:[#allocation2 + $0x50] sm:$0xff]  ;;  %v53_v19 = vld [vmem:[#allocation2 + $0x58] sm:$0xff]  ;;  %s272_s27 = scalar_lea.vmem %s143_s1, 256  ;;  %p277_p9 = scmp.lt.s32.totalorder %s143_s1, %s143_s1 }
  0x18   :  { %214 = vmatpush3.bf16.msra.mxu0 %v211_v7  ;;  %v227_v17 = vpack.c.bf16 %v51_v16, %v50_v15  ;;  %v231_v20 = vpack.c.bf16 %v53_v19, %v52_v18  ;;  %v54_v21 = vld [vmem:[#allocation2 + $0x60] sm:$0xff]  ;;  %v55_v22 = vld [vmem:[#allocation2 + $0x68] sm:$0xff]  ;;  %v56_v24 = vld [vmem:[#allocation2 + $0x70] sm:$0xff]  ;;  %p273_p8 = scmp.ne.s32.totalorder %s143_s1, %s272_s27  ;;  %p278_p10 = scmp.lt.s32.totalorder %s272_s27, %s272_s27 }
  0x19   :  { %34 = vperm.xlu0 %249, %v27_v6   ;;  %216 = vmatprep.subr.bf16.mxu0 %v215_v8  ;;  %v235_v23 = vpack.c.bf16 %v55_v22, %v54_v21  ;;  %v57_v25 = vld [vmem:[#allocation2 + $0x78] sm:$0xff] }
  0x1a   :  { %v239_v26 = vpack.c.bf16 %v57_v25, %v56_v24  ;;  %p279_p11 = por %p278_p10, %p277_p9 }
  0x1c   :  { %218 = vmatpush3.bf16.msra.mxu0 %v215_v8  ;;  %p280_p12 = pnand %p279_p11, %p273_p8 }
  0x1d   :  { %220 = vmatprep.subr.bf16.mxu0 %v219_v11 }
  0x20   :  { %222 = vmatpush3.bf16.msra.mxu0 %v219_v11 }
  0x21   :  { %224 = vmatprep.subr.bf16.mxu0 %v223_v14 }
  0x24   :  { %226 = vmatpush3.bf16.msra.mxu0 %v223_v14 }
  0x25   :  { %228 = vmatprep.subr.bf16.mxu0 %v227_v17 }
  0x28   :  { %230 = vmatpush3.bf16.msra.mxu0 %v227_v17 }
  0x29   :  { %232 = vmatprep.subr.bf16.mxu0 %v231_v20 }
  0x2c   :  { %234 = vmatpush3.bf16.msra.mxu0 %v231_v20 }
  0x2d   :  { %236 = vmatprep.subr.bf16.mxu0 %v235_v23 }
  0x30   :  { %238 = vmatpush3.bf16.msra.mxu0 %v235_v23 }
  0x31   :  { %240 = vmatprep.subr.bf16.mxu0 %v239_v26 }
  0x34   :  { %242 = vmatpush3.bf16.msra.mxu0 %v239_v26 }
  0x94   :  { %v32_v29 = vpop.permute.xlu0 %31 }
  0x95   :  { %vm36_vm0 = vcmp.eq.s32.totalorder %v29_v28, %v32_v29 }
  0x96   :  { %208 = vmatprep.mubr.msk.f32.mxu0 %vm36_vm0, %v302_v30 }
  0x98   :  { %v35_v31 = vpop.permute.xlu0 %34 }
  0x99   :  { %vm37_vm1 = vcmp.eq.s32.totalorder %v29_v28, %v35_v31 }
  0x9a   :  { %209 = vmatmul.mubr.msk.f32.vlgmr.msra.gmra.mrb[0].mxu0 %vm37_vm1, %v302_v30 }
 0x16d   :  { %v210_v32 = vpop.f32.mrb[0].mxu0 }
 0x16e   :  { %v134_v33 = vmul.f32 11.313708, %v210_v32  ;;  %v124_v34 = vpop.f32.mrb[1].mxu0 }
 0x16f   :  { %v133_v35 = vmul.f32 11.313708, %v124_v34 }
 0x170   :  { %136 = vst [vmem:[#allocation5 + $0x8] sm:$0xff] %v134_v33 }
 0x171   :  { %135 = vst [vmem:[#allocation5] sm:$0xff] %v133_v35 }
 0x172   :  { %283 = shalt.err (!%p280_p12)
}
 0x173   :  { %s284_s30 = scalar_lea.hbm %s357_s2, 256 }
 0x174   :  { %p285_p13 = scmp.ne.s32.totalorder %s357_s2, %s284_s30  ;;  %p288_p0 = scmp.lt.u32.totalorder %s284_s30, %s357_s2 }
 0x176   :  { %p290_p1 = pnand %p288_p0, %p285_p13 }
 0x178   :  { %293 = shalt.err (!%p290_p1)
}
 0x179   :  { %148 = dma.vmem_to_hbm [thread:$0]  %s143_s1, 256, %s357_s2, [#allocation4], %s299_s19, %s299_s19, %s300_s20  }
 0x17a   :  { %296 = dma.done.wait [#allocation4], 256  }
 0x17b   :  { %297 = vsyncadd [#allocation4], 4294967040 }
 0x17c   :  { %152 = vsyncpa [#allocation3], 1 }
 0x17d   :  { %153 = vsyncpa [#allocation4], 1 }

</bundles_post_ra>
